<compile_context>
chip_gen: v6e
topology: v6e:2x2x1
jax: 0.10.0
libtpu: 0.0.40
codegen_flags: <defaults>
</compile_context>

<pallas_src>
import jax
import jax.numpy as jnp
from jax.experimental import pallas as pl
from jax.experimental.pallas import tpu as pltpu

LANES = 128
MAX_BLOCK_ROWS = 4096   # (4096,128) f32 = 2 MiB per input tile
ROW_ALIGN = 16          # multiple of 16 -> valid for both f32 (8,128) and bf16 (16,128)


def _round_up(x, m):
    return ((x + m - 1) // m) * m


def _make_focal_kernel(block_rows, last_rows):
    """block_rows: static rows per block; last_rows: valid rows in the LAST block."""
    has_tail = last_rows != block_rows

    def kernel(pred_ref, gt_ref, out_ref):
        pred = pred_ref[...].astype(jnp.float32)
        gt = gt_ref[...].astype(jnp.float32)

        is_pos = gt > 0.99
        pos_f = is_pos.astype(jnp.float32)

        p = jnp.clip(pred, 1e-6, 1.0 - 1e-6)
        one_m_p = 1.0 - p

        # pos / neg branches are mutually exclusive -> single transcendental.
        logv = jnp.log(jnp.where(is_pos, p, one_m_p))
        # weight = (1-p)^2 (pos) | p^2*(1-gt)^2 (gt<0.99) | 0 (gt in [0.99, 1.0])
        neg_base = jnp.where(gt < 0.99, p * (1.0 - gt), 0.0)
        base = jnp.where(is_pos, one_m_p, neg_base)
        loss = logv * (base * base)   # == pos_loss + neg_loss elementwise

        def write(l, pf):
            # Fused (2, 128) lane-dense partial: row 0 = loss sum, row 1 = pos count.
            out_ref[...] = jnp.concatenate(
                [jnp.sum(l, axis=0, keepdims=True),
                 jnp.sum(pf, axis=0, keepdims=True)],
                axis=0,
            )

        if has_tail:
            is_last = pl.program_id(0) == pl.num_programs(0) - 1

            @pl.when(jnp.logical_not(is_last))
            def _full_block():
                write(loss, pos_f)

            @pl.when(is_last)
            def _tail_block():
                # Edge block: rows >= last_rows are undefined VMEM contents.
                # jnp.where masking is NaN/inf safe (unlike multiply-by-mask).
                row = jax.lax.broadcasted_iota(jnp.int32, loss.shape, 0)
                valid = row < last_rows
                write(jnp.where(valid, loss, 0.0), jnp.where(valid, pos_f, 0.0))
        else:
            write(loss, pos_f)

    return kernel


def _focal_partials_pallas(pred2d, gt2d):
    """Per-block (loss_sum, pos_count) partials for a (n_rows, 128) slab."""
    n_rows = pred2d.shape[0]

    # Block-size selection:
    #  * tiny inputs -> one block
    #  * otherwise aim for >= 2 grid steps (both v7x TensorCores), capped at
    #    MAX_BLOCK_ROWS so large inputs stream with 2 MiB/input tiles.
    if n_rows <= 2 * ROW_ALIGN:
        block_rows = _round_up(max(n_rows, 1), ROW_ALIGN)
    else:
        block_rows = min(MAX_BLOCK_ROWS, _round_up(-(-n_rows // 2), ROW_ALIGN))
    nblk = -(-n_rows // block_rows)              # Pallas edge blocks handle the ragged last block
    last_rows = n_rows - (nblk - 1) * block_rows

    kernel = _make_focal_kernel(block_rows, last_rows)

    parts = pl.pallas_call(
        kernel,
        out_shape=jax.ShapeDtypeStruct((nblk, 2, LANES), jnp.float32),
        grid=(nblk,),
        in_specs=[
            pl.BlockSpec((block_rows, LANES), lambda i: (i, 0)),
            pl.BlockSpec((block_rows, LANES), lambda i: (i, 0)),
        ],
        out_specs=pl.BlockSpec((None, 2, LANES), lambda i: (i, 0, 0)),
        compiler_params=pltpu.CompilerParams(
            dimension_semantics=("parallel",),
        ),
    )(pred2d, gt2d)

    return jnp.sum(parts[:, 0, :]), jnp.sum(parts[:, 1, :])


@jax.jit
def focal_loss(pred, gt):
    total = pred.size
    n_full_rows = total // LANES
    aligned = n_full_rows * LANES
    tail = total - aligned

    # Keep native dtype (bf16 or f32); cast happens in-kernel.
    pred_flat = pred.reshape(-1)
    gt_flat = gt.reshape(-1)

    loss_sum = jnp.float32(0.0)
    pos_sum = jnp.float32(0.0)

    if n_full_rows > 0:
        if tail:
            # Lane-aligned prefix (no full-array jnp.pad); reshape is free when
            # total is already a multiple of 128 (the common heatmap case).
            pred2d = pred_flat[:aligned].reshape(n_full_rows, LANES)
            gt2d = gt_flat[:aligned].reshape(n_full_rows, LANES)
        else:
            pred2d = pred_flat.reshape(n_full_rows, LANES)
            gt2d = gt_flat.reshape(n_full_rows, LANES)
        ls, ps = _focal_partials_pallas(pred2d, gt2d)
        loss_sum = loss_sum + ls
        pos_sum = pos_sum + ps

    if tail:
        # < 128 leftover elements: tiny plain-JAX pass instead of padding/copying
        # the whole tensor just to make it lane-aligned.
        pt = pred_flat[aligned:].astype(jnp.float32)
        gtt = gt_flat[aligned:].astype(jnp.float32)
        is_pos_t = gtt > 0.99
        p_t = jnp.clip(pt, 1e-6, 1.0 - 1e-6)
        logv_t = jnp.log(jnp.where(is_pos_t, p_t, 1.0 - p_t))
        base_t = jnp.where(is_pos_t, 1.0 - p_t,
                           jnp.where(gtt < 0.99, p_t * (1.0 - gtt), 0.0))
        loss_sum = loss_sum + jnp.sum(logv_t * base_t * base_t)
        pos_sum = pos_sum + jnp.sum(is_pos_t.astype(jnp.float32))

    num_pos = jnp.maximum(1.0, pos_sum)
    return -loss_sum / num_pos


def _focal_loss_ref(pred, gt):
    """Pure-JAX reference mirroring the PyTorch forward."""
    pred = pred.astype(jnp.float32)
    gt = gt.astype(jnp.float32)
    pos_inds = (gt > 0.99).astype(jnp.float32)
    neg_inds = (gt < 0.99).astype(jnp.float32)
    neg_weights = jnp.power(1.0 - gt, 2)
    p = jnp.clip(pred, 1e-06, 1.0 - 1e-06)
    pos_loss = jnp.log(p) * jnp.power(1.0 - p, 2) * pos_inds
    neg_loss = jnp.log(1.0 - p) * jnp.power(p, 2) * neg_weights * neg_inds
    num_pos = jnp.maximum(1.0, pos_inds.sum())
    return -(pos_loss.sum() + neg_loss.sum()) / num_pos


def _make_inputs(key, shape, dtype=jnp.float32):
    k1, k2 = jax.random.split(key)
    pred = jax.nn.sigmoid(jax.random.normal(k1, shape, dtype=jnp.float32))
    gt = jax.random.uniform(k2, shape, dtype=jnp.float32)
    gt = jnp.where(gt > 0.97, 1.0, gt * 0.9)   # a few exact-1.0 "positive" peaks
    return pred.astype(dtype), gt.astype(dtype)


if __name__ == "__main__":
    key = jax.random.PRNGKey(0)
    k_a, k_b, k_c = jax.random.split(key, 3)

    # 1) Small NCHW heatmap, lane-aligned (same convention as the PyTorch module).
    pred, gt = _make_inputs(k_a, (2, 4, 16, 16))
    loss = focal_loss(pred, gt)
    jax.block_until_ready(loss)
    ref = _focal_loss_ref(pred, gt)
    assert jnp.allclose(loss, ref, rtol=1e-5, atol=1e-5), (loss, ref)

    # 2) Ragged shape: exercises multi-block grid, edge-block where-mask, and the
    #    plain-JAX <128-element remainder path (total = 4845).
    pred2, gt2 = _make_inputs(k_b, (3, 5, 17, 19))
    loss2 = focal_loss(pred2, gt2)
    jax.block_until_ready(loss2)
    ref2 = _focal_loss_ref(pred2, gt2)
    assert jnp.allclose(loss2, ref2, rtol=1e-5, atol=1e-5), (loss2, ref2)

    # 3) Larger aligned input: >= 2 parallel grid steps (v7x both-TC path).
    pred3, gt3 = _make_inputs(k_c, (4, 8, 32, 64))
    loss3 = focal_loss(pred3, gt3)
    jax.block_until_ready(loss3)
    ref3 = _focal_loss_ref(pred3, gt3)
    assert jnp.allclose(loss3, ref3, rtol=1e-5, atol=1e-5), (loss3, ref3)

    # 4) bf16 inputs fed directly (no wrapper astype); kernel upcasts to f32.
    pred4, gt4 = _make_inputs(k_a, (2, 4, 16, 16), dtype=jnp.bfloat16)
    loss4 = focal_loss(pred4, gt4)
    jax.block_until_ready(loss4)
    ref4 = _focal_loss_ref(pred4, gt4)
    assert jnp.allclose(loss4, ref4, rtol=1e-4, atol=1e-4), (loss4, ref4)

    print("KERNEL_OK")
</pallas_src>

<mosaic_0001>
module attributes {stable_mosaic.version = 11 : i64} {
  func.func @kernel(%arg0: i32, %arg1: memref<16x128xf32, #tpu.memory_space<vmem>>, %arg2: memref<16x128xf32, #tpu.memory_space<vmem>>, %arg3: memref<1x2x128xf32, #tpu.memory_space<vmem>>) attributes {dimension_semantics = [#tpu.dimension_semantics<parallel>], iteration_bounds = array<i64: 1>, scalar_prefetch = 0 : i64, scratch_operands = 0 : i64, tpu.core_type = #tpu.core_type<tc>, window_params = [{transform_indices = @transform_0, window_bounds = array<i64: 16, 128>}, {transform_indices = @transform_1, window_bounds = array<i64: 16, 128>}, {transform_indices = @transform_2, window_bounds = array<i64: 1, 2, 128>}]} {
    %c0 = arith.constant 0 : index
    %c0_0 = arith.constant 0 : index
    %0 = vector.load %arg1[%c0, %c0_0] : memref<16x128xf32, #tpu.memory_space<vmem>>, vector<16x128xf32>
    %c0_1 = arith.constant 0 : index
    %c0_2 = arith.constant 0 : index
    %1 = vector.load %arg2[%c0_1, %c0_2] : memref<16x128xf32, #tpu.memory_space<vmem>>, vector<16x128xf32>
    %cst = arith.constant 9.900000e-01 : f32
    %2 = vector.broadcast %cst : f32 to vector<16x128xf32>
    %3 = arith.cmpf ogt, %1, %2 : vector<16x128xf32>
    %4 = arith.extui %3 : vector<16x128xi1> to vector<16x128xi32>
    %5 = arith.sitofp %4 : vector<16x128xi32> to vector<16x128xf32>
    %cst_3 = arith.constant 9.99999997E-7 : f32
    %cst_4 = arith.constant 0.999998986 : f32
    %6 = vector.broadcast %cst_3 : f32 to vector<16x128xf32>
    %7 = arith.maximumf %6, %0 : vector<16x128xf32>
    %8 = vector.broadcast %cst_4 : f32 to vector<16x128xf32>
    %9 = arith.minimumf %8, %7 : vector<16x128xf32>
    %cst_5 = arith.constant 1.000000e+00 : f32
    %10 = vector.broadcast %cst_5 : f32 to vector<16x128xf32>
    %11 = arith.subf %10, %9 : vector<16x128xf32>
    %12 = arith.select %3, %9, %11 : vector<16x128xi1>, vector<16x128xf32>
    %13 = math.log %12 : vector<16x128xf32>
    %cst_6 = arith.constant 9.900000e-01 : f32
    %14 = vector.broadcast %cst_6 : f32 to vector<16x128xf32>
    %15 = arith.cmpf olt, %1, %14 : vector<16x128xf32>
    %cst_7 = arith.constant 1.000000e+00 : f32
    %16 = vector.broadcast %cst_7 : f32 to vector<16x128xf32>
    %17 = arith.subf %16, %1 : vector<16x128xf32>
    %18 = arith.mulf %9, %17 : vector<16x128xf32>
    %cst_8 = arith.constant 0.000000e+00 : f32
    %19 = vector.broadcast %cst_8 : f32 to vector<16x128xf32>
    %20 = arith.select %15, %18, %19 : vector<16x128xi1>, vector<16x128xf32>
    %21 = arith.select %3, %11, %20 : vector<16x128xi1>, vector<16x128xf32>
    %22 = arith.mulf %21, %21 : vector<16x128xf32>
    %23 = arith.mulf %13, %22 : vector<16x128xf32>
    %cst_9 = arith.constant dense<0.000000e+00> : vector<128xf32>
    %24 = vector.multi_reduction <add>, %23, %cst_9 [0] : vector<16x128xf32> to vector<128xf32>
    %25 = vector.shape_cast %24 : vector<128xf32> to vector<1x128xf32>
    %cst_10 = arith.constant dense<0.000000e+00> : vector<128xf32>
    %26 = vector.multi_reduction <add>, %5, %cst_10 [0] : vector<16x128xf32> to vector<128xf32>
    %27 = vector.shape_cast %26 : vector<128xf32> to vector<1x128xf32>
    %28 = tpu.concatenate %25, %27 in 0 : vector<1x128xf32>, vector<1x128xf32> -> vector<2x128xf32>
    %c0_11 = arith.constant 0 : index
    %c0_12 = arith.constant 0 : index
    %c0_13 = arith.constant 0 : index
    %29 = vector.load %arg3[%c0_11, %c0_12, %c0_13] : memref<1x2x128xf32, #tpu.memory_space<vmem>>, vector<1x2x128xf32>
    %30 = vector.shape_cast %29 : vector<1x2x128xf32> to vector<2x128xf32>
    %31 = vector.shape_cast %28 : vector<2x128xf32> to vector<1x2x128xf32>
    tpu.vector_store %arg3[%c0_11, %c0_12, %c0_13], %31 {strides = array<i32>} : memref<1x2x128xf32, #tpu.memory_space<vmem>>, vector<1x2x128xf32>,
    return
  }
  func.func @transform_0(%arg0: i32) -> (i32, i32) {
    %c0_i32 = arith.constant 0 : i32
    %c0_i32_0 = arith.constant 0 : i32
    return %arg0, %c0_i32 : i32, i32
  }
  func.func @transform_1(%arg0: i32) -> (i32, i32) {
    %c0_i32 = arith.constant 0 : i32
    %c0_i32_0 = arith.constant 0 : i32
    return %arg0, %c0_i32 : i32, i32
  }
  func.func @transform_2(%arg0: i32) -> (i32, i32, i32) {
    %c0_i32 = arith.constant 0 : i32
    %c0_i32_0 = arith.constant 0 : i32
    %c0_i32_1 = arith.constant 0 : i32
    return %arg0, %c0_i32, %c0_i32_0 : i32, i32, i32
  }
}

</mosaic_0001>

<bundles_post_ra>
// kernel: focal_loss.1
= control target key start
LH: loop header
LB: loop body
LE: loop exit
PB: predicated region body
PF: predicated region fallthrough
CT: control target
= control target key end

     0   :  { %v75_v14 = vmov 0.0   ;;  %vm61_vm4 = vcmask 1040384   ;;  %s112_s0 = inlined_call_operand.vmem [shape: f32[16,128], index: 0, kind: input, shape index: {}]   ;;  %s113_s1 = inlined_call_operand.vmem [shape: f32[16,128], index: 1, kind: input, shape index: {}]   ;;  %s114_s2 = inlined_call_operand.vmem [shape: f32[1,2,128], index: 2, kind: output, shape index: {}]  }
   0x1   :  { %v11_v0 = vld [vmem:[%s112_s0] sm:$0xff]  ;;  %v12_v1 = vld [vmem:[%s112_s0 + $0x8] sm:$0xff] }
   0x2   :  { %v13_v2 = vld [vmem:[%s113_s1] sm:$0xff]  ;;  %v21_v3 = vmax.f32 %v11_v0, 1e-06  ;;  %v14_v4 = vld [vmem:[%s113_s1 + $0x8] sm:$0xff]  ;;  %v22_v5 = vmax.f32 %v12_v1, 1e-06 }
   0x3   :  { %vm15_vm0 = vcmp.gt.f32.partialorder %v13_v2, 0.99  ;;  %vm16_vm1 = vcmp.gt.f32.partialorder %v14_v4, 0.99  ;;  %v35_v10 = vsub.f32 1.0, %v13_v2  ;;  %v36_v12 = vsub.f32 1.0, %v14_v4 }
   0x4   :  { %v23_v6 = vmin.f32 %v21_v3, 0.999999  ;;  %v24_v7 = vmin.f32 %v22_v5, 0.999999  ;;  %v68_v15 = vsel %vm15_vm0, 1.0, %v75_v14  ;;  %v69_v16 = vsel %vm16_vm1, 1.0, %v75_v14 }
   0x5   :  { %vm33_vm2 = vcmp.lt.f32.partialorder %v13_v2, 0.99  ;;  %vm34_vm3 = vcmp.lt.f32.partialorder %v14_v4, 0.99  ;;  %v54_v19 = vadd.f32 %v69_v16, %v68_v15 }
   0x6   :  { %v25_v8 = vsub.f32 1.0, %v23_v6  ;;  %v26_v9 = vsub.f32 1.0, %v24_v7  ;;  %v37_v17 = vmul.f32 %v35_v10, %v23_v6  ;;  %v38_v18 = vmul.f32 %v36_v12, %v24_v7 }
   0x7   :  { %v55_v23 = vrot.slane %v54_v19, 4 }
   0x8   :  { %v27_v11 = vsel %vm15_vm0, %v23_v6, %v25_v8  ;;  %v28_v13 = vsel %vm16_vm1, %v24_v7, %v26_v9  ;;  %v39_v20 = vsel %vm33_vm2, %v37_v17, 0.0  ;;  %v40_v21 = vsel %vm34_vm3, %v38_v18, 0.0 }
   0x9   :  { %71 = vlog2.f32 %v27_v11  ;;  %v41_v22 = vsel %vm15_vm0, %v25_v8, %v39_v20  ;;  %v42_v24 = vsel %vm16_vm1, %v26_v9, %v40_v21  ;;  %v56_v28 = vadd.f32 %v55_v23, %v54_v19 }
   0xa   :  { %73 = vlog2.f32 %v28_v13  ;;  %v43_v25 = vmul.f32 %v41_v22, %v41_v22  ;;  %v44_v27 = vmul.f32 %v42_v24, %v42_v24 }
   0xb   :  { %v57_v34 = vrot.slane %v56_v28, 2 }
   0xd   :  { %v58_v37 = vadd.f32 %v57_v34, %v56_v28 }
   0xf   :  { %v59_v40 = vrot.slane %v58_v37, 1 }
  0x11   :  { %v60_v43 = vadd.f32 %v59_v40, %v58_v37 }
  0x16   :  { %v72_v26 = vpop.eup %71 }
  0x17   :  { %v74_v29 = vpop.eup %73  ;;  %v30_v30 = vmul.f32 0.6931472, %v72_v26 }
  0x18   :  { %v32_v31 = vmul.f32 0.6931472, %v74_v29 }
  0x19   :  { %v45_v32 = vmul.f32 %v43_v25, %v30_v30 }
  0x1a   :  { %v46_v33 = vmul.f32 %v44_v27, %v32_v31 }
  0x1c   :  { %v47_v35 = vadd.f32 %v46_v33, %v45_v32 }
  0x1e   :  { %v48_v36 = vrot.slane %v47_v35, 4 }
  0x20   :  { %v49_v38 = vadd.f32 %v48_v36, %v47_v35 }
  0x22   :  { %v50_v39 = vrot.slane %v49_v38, 2 }
  0x24   :  { %v51_v41 = vadd.f32 %v50_v39, %v49_v38 }
  0x26   :  { %v52_v42 = vrot.slane %v51_v41, 1 }
  0x28   :  { %v53_v44 = vadd.f32 %v52_v42, %v51_v41 }
  0x2a   :  { %v62_v45 = vsel %vm61_vm4, %v53_v44, %v60_v43 }
  0x2b   :  { %63 = vst [vmem:[%s114_s2] sm:$0x3] %v62_v45 }

</bundles_post_ra>
